<compile_context>
chip_gen: v7x
topology: tpu7x:2x2x1
jax: 0.10.0
libtpu: 0.0.40
codegen_flags: <defaults>
</compile_context>

<pallas_src>
import functools

import jax
import jax.numpy as jnp
from jax import lax
from jax.experimental import pallas as pl
from jax.experimental.pallas import tpu as pltpu


def _identity_value(dtype, operation):
    """Reduction identity: -inf for max-pool (dilation), +inf for min-pool (erosion)."""
    if jnp.issubdtype(dtype, jnp.floating):
        return float("inf") if operation == "erosion" else float("-inf")
    info = jnp.iinfo(dtype)
    return int(info.max) if operation == "erosion" else int(info.min)


def _morph_kernel(x_ref, o_ref, rows_ref, cols_ref, *, operation, k, fill_val):
    """Processes one block of B planes.

    x_ref   : (B, H, W)         input planes
    o_ref   : (B, H, W)         output planes
    rows_ref: (B, H + k - 1, W) scratch: row-halo padded copy of the block
    cols_ref: (B, H, W + k - 1) scratch: col-halo padded copy of the row-reduced block
    """
    pad = k // 2
    B, H, W = x_ref.shape
    dtype = x_ref.dtype
    combine = jnp.minimum if operation == "erosion" else jnp.maximum

    # ---- pass 1: reduce over the k row shifts (sublane axis) ----
    rows_ref[:, :pad, :] = jnp.full((B, pad, W), fill_val, dtype)
    rows_ref[:, pad + H:, :] = jnp.full((B, pad, W), fill_val, dtype)
    rows_ref[:, pad:pad + H, :] = x_ref[...]

    r = rows_ref[:, 0:H, :]
    for d in range(1, k):
        r = combine(r, rows_ref[:, d:d + H, :])

    # ---- pass 2: reduce over the k column shifts (lane axis) ----
    cols_ref[:, :, :pad] = jnp.full((B, H, pad), fill_val, dtype)
    cols_ref[:, :, pad + W:] = jnp.full((B, H, pad), fill_val, dtype)
    cols_ref[:, :, pad:pad + W] = r

    acc = cols_ref[:, :, 0:W]
    for d in range(1, k):
        acc = combine(acc, cols_ref[:, :, d:d + W])

    o_ref[...] = acc


def _round_up(v, m):
    return -(-v // m) * m


def morphological_layer(x, operation="dilation", kernel_size=3):
    """x: (N, C, H, W) array. Returns same shape/dtype. Matches the PyTorch module."""
    if operation not in ("dilation", "erosion"):
        raise ValueError(f"unknown operation: {operation}")
    # PyTorch MaxPool2d(k, stride=1, padding=k//2) changes the spatial size for even
    # k (output is H+1); only the shape-preserving odd-k case is implemented here.
    if kernel_size < 1 or kernel_size % 2 == 0:
        raise NotImplementedError("only odd kernel_size is supported")
    N, C, H, W = x.shape
    if kernel_size == 1:
        return x  # 1x1 window is the identity

    k = kernel_size
    pad = k // 2
    P = N * C
    dtype = x.dtype
    fill_val = _identity_value(dtype, operation)
    xf = x.reshape(P, H, W)

    # ---- choose how many planes to batch per grid step (VMEM budget) ----
    itemsize = jnp.dtype(dtype).itemsize
    h8, w128 = _round_up(H, 8), _round_up(W, 128)
    hp8, wp128 = _round_up(H + 2 * pad, 8), _round_up(W + 2 * pad, 128)
    per_plane = itemsize * (
        2 * h8 * w128      # input block, double buffered
        + 2 * h8 * w128    # output block, double buffered
        + hp8 * w128       # row-halo scratch
        + h8 * wp128       # col-halo scratch
    )
    budget = 8 * 1024 * 1024          # keeps well under 32 MiB scoped VMEM on all chips
    # TODO(synk): planes larger than the VMEM budget would need spatial tiling with a
    # halo; not needed for typical image sizes.
    B = int(max(1, min(P, budget // per_plane)))
    grid = (pl.cdiv(P, B),)

    kernel = functools.partial(
        _morph_kernel, operation=operation, k=k, fill_val=fill_val)

    out = pl.pallas_call(
        kernel,
        out_shape=jax.ShapeDtypeStruct((P, H, W), dtype),
        grid_spec=pltpu.PrefetchScalarGridSpec(
            num_scalar_prefetch=0,
            grid=grid,
            in_specs=[pl.BlockSpec((B, H, W), lambda i: (i, 0, 0))],
            out_specs=pl.BlockSpec((B, H, W), lambda i: (i, 0, 0)),
            scratch_shapes=[
                pltpu.VMEM((B, H + 2 * pad, W), dtype),
                pltpu.VMEM((B, H, W + 2 * pad), dtype),
            ],
        ),
        compiler_params=pltpu.CompilerParams(
            dimension_semantics=("parallel",),
            vmem_limit_bytes=32 * 1024 * 1024,
        ),
    )(xf)
    return out.reshape(N, C, H, W)


def _reference(x, operation="dilation", kernel_size=3):
    # Pure-JAX reference mirroring PyTorch MaxPool2d(stride=1, padding=k//2).
    pad = kernel_size // 2
    sign = -1.0 if operation == "erosion" else 1.0
    y = lax.reduce_window(
        sign * x,
        -jnp.inf,
        lax.max,
        window_dimensions=(1, 1, kernel_size, kernel_size),
        window_strides=(1, 1, 1, 1),
        padding=((0, 0), (0, 0), (pad, pad), (pad, pad)),
    )
    return sign * y


if __name__ == "__main__":
    key = jax.random.PRNGKey(0)
    x = jax.random.normal(key, (2, 4, 16, 16), dtype=jnp.float32)

    cases = [("dilation", 3), ("erosion", 3), ("dilation", 5), ("erosion", 5)]
    for op, ks in cases:
        out = jax.block_until_ready(
            morphological_layer(x, operation=op, kernel_size=ks))
        ref = _reference(x, operation=op, kernel_size=ks)
        if not jnp.allclose(out, ref, atol=1e-6, rtol=1e-6):
            raise RuntimeError(f"mismatch for operation={op}, kernel_size={ks}")
    print("KERNEL_OK")
</pallas_src>

<mosaic_0001>
module attributes {stable_mosaic.version = 11 : i64} {
  func.func @_morph_kernel(%arg0: i32, %arg1: memref<8x16x16xf32, #tpu.memory_space<vmem>>, %arg2: memref<8x16x16xf32, #tpu.memory_space<vmem>>, %arg3: memref<8x18x16xf32, #tpu.memory_space<vmem>>, %arg4: memref<8x16x18xf32, #tpu.memory_space<vmem>>) attributes {dimension_semantics = [#tpu.dimension_semantics<parallel>], iteration_bounds = array<i64: 1>, scalar_prefetch = 0 : i64, scratch_operands = 2 : i64, tpu.core_type = #tpu.core_type<tc>, window_params = [{transform_indices = @transform_0, window_bounds = array<i64: 8, 16, 16>}, {transform_indices = @transform_1, window_bounds = array<i64: 8, 16, 16>}]} {
    %cst = arith.constant 0xFF800000 : f32
    %0 = vector.broadcast %cst : f32 to vector<8x1x16xf32>
    %c0 = arith.constant 0 : index
    %c0_0 = arith.constant 0 : index
    %c0_1 = arith.constant 0 : index
    %1 = vector.load %arg3[%c0, %c0_0, %c0_1] : memref<8x18x16xf32, #tpu.memory_space<vmem>>, vector<8x1x16xf32>
    tpu.vector_store %arg3[%c0, %c0_0, %c0_1], %0 {strides = array<i32>} : memref<8x18x16xf32, #tpu.memory_space<vmem>>, vector<8x1x16xf32>,
    %cst_2 = arith.constant 0xFF800000 : f32
    %2 = vector.broadcast %cst_2 : f32 to vector<8x1x16xf32>
    %c0_3 = arith.constant 0 : index
    %c17 = arith.constant 17 : index
    %c0_4 = arith.constant 0 : index
    %3 = vector.load %arg3[%c0_3, %c17, %c0_4] : memref<8x18x16xf32, #tpu.memory_space<vmem>>, vector<8x1x16xf32>
    tpu.vector_store %arg3[%c0_3, %c17, %c0_4], %2 {strides = array<i32>} : memref<8x18x16xf32, #tpu.memory_space<vmem>>, vector<8x1x16xf32>,
    %c0_5 = arith.constant 0 : index
    %c0_6 = arith.constant 0 : index
    %c0_7 = arith.constant 0 : index
    %4 = vector.load %arg1[%c0_5, %c0_6, %c0_7] : memref<8x16x16xf32, #tpu.memory_space<vmem>>, vector<8x16x16xf32>
    %c0_8 = arith.constant 0 : index
    %c1 = arith.constant 1 : index
    %c0_9 = arith.constant 0 : index
    %5 = vector.load %arg3[%c0_8, %c1, %c0_9] : memref<8x18x16xf32, #tpu.memory_space<vmem>>, vector<8x16x16xf32>
    tpu.vector_store %arg3[%c0_8, %c1, %c0_9], %4 {strides = array<i32>} : memref<8x18x16xf32, #tpu.memory_space<vmem>>, vector<8x16x16xf32>,
    %c0_10 = arith.constant 0 : index
    %c0_11 = arith.constant 0 : index
    %c0_12 = arith.constant 0 : index
    %6 = vector.load %arg3[%c0_10, %c0_11, %c0_12] : memref<8x18x16xf32, #tpu.memory_space<vmem>>, vector<8x16x16xf32>
    %c0_13 = arith.constant 0 : index
    %c1_14 = arith.constant 1 : index
    %c0_15 = arith.constant 0 : index
    %7 = vector.load %arg3[%c0_13, %c1_14, %c0_15] : memref<8x18x16xf32, #tpu.memory_space<vmem>>, vector<8x16x16xf32>
    %8 = arith.maximumf %6, %7 : vector<8x16x16xf32>
    %c0_16 = arith.constant 0 : index
    %c2 = arith.constant 2 : index
    %c0_17 = arith.constant 0 : index
    %9 = vector.load %arg3[%c0_16, %c2, %c0_17] : memref<8x18x16xf32, #tpu.memory_space<vmem>>, vector<8x16x16xf32>
    %10 = arith.maximumf %8, %9 : vector<8x16x16xf32>
    %cst_18 = arith.constant 0xFF800000 : f32
    %11 = vector.broadcast %cst_18 : f32 to vector<8x16x1xf32>
    %c0_19 = arith.constant 0 : index
    %c0_20 = arith.constant 0 : index
    %c0_21 = arith.constant 0 : index
    %12 = vector.load %arg4[%c0_19, %c0_20, %c0_21] : memref<8x16x18xf32, #tpu.memory_space<vmem>>, vector<8x16x1xf32>
    tpu.vector_store %arg4[%c0_19, %c0_20, %c0_21], %11 {strides = array<i32>} : memref<8x16x18xf32, #tpu.memory_space<vmem>>, vector<8x16x1xf32>,
    %cst_22 = arith.constant 0xFF800000 : f32
    %13 = vector.broadcast %cst_22 : f32 to vector<8x16x1xf32>
    %c0_23 = arith.constant 0 : index
    %c0_24 = arith.constant 0 : index
    %c17_25 = arith.constant 17 : index
    %14 = vector.load %arg4[%c0_23, %c0_24, %c17_25] : memref<8x16x18xf32, #tpu.memory_space<vmem>>, vector<8x16x1xf32>
    tpu.vector_store %arg4[%c0_23, %c0_24, %c17_25], %13 {strides = array<i32>} : memref<8x16x18xf32, #tpu.memory_space<vmem>>, vector<8x16x1xf32>,
    %c0_26 = arith.constant 0 : index
    %c0_27 = arith.constant 0 : index
    %c1_28 = arith.constant 1 : index
    %15 = vector.load %arg4[%c0_26, %c0_27, %c1_28] : memref<8x16x18xf32, #tpu.memory_space<vmem>>, vector<8x16x16xf32>
    tpu.vector_store %arg4[%c0_26, %c0_27, %c1_28], %10 {strides = array<i32>} : memref<8x16x18xf32, #tpu.memory_space<vmem>>, vector<8x16x16xf32>,
    %c0_29 = arith.constant 0 : index
    %c0_30 = arith.constant 0 : index
    %c0_31 = arith.constant 0 : index
    %16 = vector.load %arg4[%c0_29, %c0_30, %c0_31] : memref<8x16x18xf32, #tpu.memory_space<vmem>>, vector<8x16x16xf32>
    %c0_32 = arith.constant 0 : index
    %c0_33 = arith.constant 0 : index
    %c1_34 = arith.constant 1 : index
    %17 = vector.load %arg4[%c0_32, %c0_33, %c1_34] : memref<8x16x18xf32, #tpu.memory_space<vmem>>, vector<8x16x16xf32>
    %18 = arith.maximumf %16, %17 : vector<8x16x16xf32>
    %c0_35 = arith.constant 0 : index
    %c0_36 = arith.constant 0 : index
    %c2_37 = arith.constant 2 : index
    %19 = vector.load %arg4[%c0_35, %c0_36, %c2_37] : memref<8x16x18xf32, #tpu.memory_space<vmem>>, vector<8x16x16xf32>
    %20 = arith.maximumf %18, %19 : vector<8x16x16xf32>
    %c0_38 = arith.constant 0 : index
    %c0_39 = arith.constant 0 : index
    %c0_40 = arith.constant 0 : index
    %21 = vector.load %arg2[%c0_38, %c0_39, %c0_40] : memref<8x16x16xf32, #tpu.memory_space<vmem>>, vector<8x16x16xf32>
    tpu.vector_store %arg2[%c0_38, %c0_39, %c0_40], %20 {strides = array<i32>} : memref<8x16x16xf32, #tpu.memory_space<vmem>>, vector<8x16x16xf32>,
    return
  }
  func.func @transform_0(%arg0: i32) -> (i32, i32, i32) {
    %c0_i32 = arith.constant 0 : i32
    %c0_i32_0 = arith.constant 0 : i32
    %c0_i32_1 = arith.constant 0 : i32
    return %arg0, %c0_i32, %c0_i32_0 : i32, i32, i32
  }
  func.func @transform_1(%arg0: i32) -> (i32, i32, i32) {
    %c0_i32 = arith.constant 0 : i32
    %c0_i32_0 = arith.constant 0 : i32
    %c0_i32_1 = arith.constant 0 : i32
    return %arg0, %c0_i32, %c0_i32_0 : i32, i32, i32
  }
}

</mosaic_0001>

<bundles_post_ra>
// kernel: tpu_custom_call.1
= control target key start
LH: loop header
LB: loop body
LE: loop exit
PB: predicated region body
PF: predicated region fallthrough
CT: control target
= control target key end

     0   :  { %6 = vsyncpa [#allocation5], 0  ;;  %s776_s0 = inlined_call_operand.hbm [shape: f32[8,16,16], index: 0, kind: input, shape index: {}]   ;;  %s777_s1 = inlined_call_operand.hbm [shape: f32[8,16,16], index: 1, kind: output, shape index: {}]  }
   0x1   :  { %7 = vsyncpa [#allocation6], 0  ;;  %s517_s6 = smov [#allocation4]   ;;  %s469_s10 = scalar_lea.hbm %s776_s0, 2048 }
   0x2   :  { %s13_s7 = sshll.u32 %s517_s6, 4  ;;  %p470_p0 = scmp.ne.s32.totalorder %s776_s0, %s469_s10  ;;  %s14_s7 = int_to_ptr.vmem [resolvable:$true] %s13_s7 }
   0x3   :  { %p473_p1 = scmp.lt.u32.totalorder %s469_s10, %s776_s0 }
   0x5   :  { %p475_p2 = pnand %p473_p1, %p470_p0 }
   0x7   :  { %478 = shalt.err (!%p475_p2)
}
   0x8   :  { %s479_s15 = scalar_lea.vmem %s14_s7, 2048  ;;  %p484_p4 = scmp.lt.s32.totalorder %s14_s7, %s14_s7 }
   0x9   :  { %p480_p3 = scmp.ne.s32.totalorder %s14_s7, %s479_s15  ;;  %p485_p5 = scmp.lt.s32.totalorder %s479_s15, %s479_s15 }
   0xb   :  { %p486_p6 = por %p485_p5, %p484_p4 }
   0xd   :  { %p487_p7 = pnand %p486_p6, %p480_p3 }
   0xf   :  { %490 = shalt.err (!%p487_p7)
}
  0x10   :  { %s518_s16 = smov 128   ;;  %s519_s17 = smov 8  }
  0x11   :  { %19 = dma.hbm_to_vmem [thread:$0]  %s776_s0, 2048, %s14_s7, [#allocation5], %s518_s16, %s518_s16, %s519_s17  }
  0x12   :  { %513 = dma.done.wait [#allocation5], 2048  }
  0x13   :  { %514 = vsyncadd [#allocation5], 4294965248  ;;  %vm23_vm0 = vcmask 122880   ;;  %v520_v0 = vmov -inf   ;;  %vm153_vm1 = vcmask 7168   ;;  %vm170_vm2 = vcmask 146568  }
  0x14   :  { %24 = vst.msk [vmem:[#allocation2] sm:$0x1] %vm23_vm0, %v520_v0  ;;  %25 = vst.msk [vmem:[#allocation2 + $0x18] sm:$0x1] %vm23_vm0, %v520_v0  ;;  %vm56_vm3 = vcmask 130048   ;;  %v40_v1 = vld [vmem:[#allocation4] sm:$0xff] }
  0x15   :  { %26 = vst.msk [vmem:[#allocation2 + $0x30] sm:$0x1] %vm23_vm0, %v520_v0  ;;  %27 = vst.msk [vmem:[#allocation2 + $0x48] sm:$0x1] %vm23_vm0, %v520_v0  ;;  %v41_v2 = vld [vmem:[#allocation4 + $0x8] sm:$0xff]  ;;  %v42_v3 = vld [vmem:[#allocation4 + $0x10] sm:$0xff] }
  0x16   :  { %28 = vst.msk [vmem:[#allocation2 + $0x60] sm:$0x1] %vm23_vm0, %v520_v0  ;;  %29 = vst.msk [vmem:[#allocation2 + $0x78] sm:$0x1] %vm23_vm0, %v520_v0  ;;  %v43_v4 = vld [vmem:[#allocation4 + $0x18] sm:$0xff]  ;;  %v44_v5 = vld [vmem:[#allocation4 + $0x20] sm:$0xff] }
  0x17   :  { %30 = vst.msk [vmem:[#allocation2 + $0x90] sm:$0x1] %vm23_vm0, %v520_v0  ;;  %31 = vst.msk [vmem:[#allocation2 + $0xa8] sm:$0x1] %vm23_vm0, %v520_v0  ;;  %v45_v6 = vld [vmem:[#allocation4 + $0x28] sm:$0xff]  ;;  %v46_v7 = vld [vmem:[#allocation4 + $0x30] sm:$0xff] }
  0x18   :  { %32 = vst.msk [vmem:[#allocation2 + $0x11] sm:$0x1] %vm23_vm0, %v520_v0  ;;  %33 = vst.msk [vmem:[#allocation2 + $0x29] sm:$0x1] %vm23_vm0, %v520_v0  ;;  %v47_v8 = vld [vmem:[#allocation4 + $0x38] sm:$0xff]  ;;  %v48_v9 = vld [vmem:[#allocation4 + $0x40] sm:$0xff] }
  0x19   :  { %34 = vst.msk [vmem:[#allocation2 + $0x41] sm:$0x1] %vm23_vm0, %v520_v0  ;;  %35 = vst.msk [vmem:[#allocation2 + $0x59] sm:$0x1] %vm23_vm0, %v520_v0  ;;  %v49_v10 = vld [vmem:[#allocation4 + $0x48] sm:$0xff]  ;;  %v50_v11 = vld [vmem:[#allocation4 + $0x50] sm:$0xff] }
  0x1a   :  { %36 = vst.msk [vmem:[#allocation2 + $0x71] sm:$0x1] %vm23_vm0, %v520_v0  ;;  %37 = vst.msk [vmem:[#allocation2 + $0x89] sm:$0x1] %vm23_vm0, %v520_v0  ;;  %v51_v12 = vld [vmem:[#allocation4 + $0x58] sm:$0xff]  ;;  %v52_v13 = vld [vmem:[#allocation4 + $0x60] sm:$0xff] }
  0x1b   :  { %38 = vst.msk [vmem:[#allocation2 + $0xa1] sm:$0x1] %vm23_vm0, %v520_v0  ;;  %39 = vst.msk [vmem:[#allocation2 + $0xb9] sm:$0x1] %vm23_vm0, %v520_v0  ;;  %v53_v14 = vld [vmem:[#allocation4 + $0x68] sm:$0xff]  ;;  %v54_v15 = vld [vmem:[#allocation4 + $0x70] sm:$0xff] }
  0x1c   :  { %154 = vst.msk [vmem:[#allocation3] sm:$0xff] %vm153_vm1, %v520_v0  ;;  %155 = vst.msk [vmem:[#allocation3 + $0x8] sm:$0xff] %vm153_vm1, %v520_v0  ;;  %v55_v16 = vld [vmem:[#allocation4 + $0x78] sm:$0xff]  ;;  %s521_s0 = smov 1   ;;  %vm251_vm4 = vcmask 138248   ;;  %s522_s20 = smov 127  }
  0x1d   :  { %156 = vst.msk [vmem:[#allocation3 + $0x10] sm:$0xff] %vm153_vm1, %v520_v0  ;;  %157 = vst.msk [vmem:[#allocation3 + $0x18] sm:$0xff] %vm153_vm1, %v520_v0  ;;  %s523_s21 = smov 126   ;;  %s524_s22 = smov [#allocation7]  }
  0x1e   :  { %158 = vst.msk [vmem:[#allocation3 + $0x20] sm:$0xff] %vm153_vm1, %v520_v0  ;;  %159 = vst.msk [vmem:[#allocation3 + $0x28] sm:$0xff] %vm153_vm1, %v520_v0  ;;  %s449_s23 = sshll.u32 %s524_s22, 4  ;;  %s450_s23 = int_to_ptr.vmem [resolvable:$true] %s449_s23 }
  0x1f   :  { %160 = vst.msk [vmem:[#allocation3 + $0x30] sm:$0xff] %vm153_vm1, %v520_v0  ;;  %161 = vst.msk [vmem:[#allocation3 + $0x38] sm:$0xff] %vm153_vm1, %v520_v0  ;;  %s491_s24 = scalar_lea.vmem %s450_s23, 2048  ;;  %p496_p9 = scmp.lt.s32.totalorder %s450_s23, %s450_s23 }
  0x20   :  { %162 = vst.msk [vmem:[#allocation3 + $0x40] sm:$0xff] %vm153_vm1, %v520_v0  ;;  %163 = vst.msk [vmem:[#allocation3 + $0x48] sm:$0xff] %vm153_vm1, %v520_v0  ;;  %p492_p8 = scmp.ne.s32.totalorder %s450_s23, %s491_s24  ;;  %p497_p10 = scmp.lt.s32.totalorder %s491_s24, %s491_s24 }
  0x21   :  { %164 = vst.msk [vmem:[#allocation3 + $0x50] sm:$0xff] %vm153_vm1, %v520_v0  ;;  %165 = vst.msk [vmem:[#allocation3 + $0x58] sm:$0xff] %vm153_vm1, %v520_v0 }
  0x22   :  { %166 = vst.msk [vmem:[#allocation3 + $0x60] sm:$0xff] %vm153_vm1, %v520_v0  ;;  %167 = vst.msk [vmem:[#allocation3 + $0x68] sm:$0xff] %vm153_vm1, %v520_v0  ;;  %p498_p11 = por %p497_p10, %p496_p9 }
  0x23   :  { %168 = vst.msk [vmem:[#allocation3 + $0x70] sm:$0xff] %vm153_vm1, %v520_v0  ;;  %169 = vst.msk [vmem:[#allocation3 + $0x78] sm:$0xff] %vm153_vm1, %v520_v0 }
  0x24   :  { %171 = vst.msk [vmem:[#allocation3] sm:$0xff] %vm170_vm2, %v520_v0  ;;  %173 = vst.msk [vmem:[#allocation3 + $0x10] sm:$0xff] %vm170_vm2, %v520_v0  ;;  %p499_p12 = pnand %p498_p11, %p492_p8 }
  0x25   :  { %172 = vst.msk [vmem:[#allocation3 + $0x8] sm:$0xff] %vm170_vm2, %v520_v0  ;;  %174 = vst.msk [vmem:[#allocation3 + $0x18] sm:$0xff] %vm170_vm2, %v520_v0 }
  0x26   :  { %175 = vst.msk [vmem:[#allocation3 + $0x20] sm:$0xff] %vm170_vm2, %v520_v0  ;;  %176 = vst.msk [vmem:[#allocation3 + $0x28] sm:$0xff] %vm170_vm2, %v520_v0 }
  0x27   :  { %177 = vst.msk [vmem:[#allocation3 + $0x30] sm:$0xff] %vm170_vm2, %v520_v0  ;;  %178 = vst.msk [vmem:[#allocation3 + $0x38] sm:$0xff] %vm170_vm2, %v520_v0 }
  0x28   :  { %179 = vst.msk [vmem:[#allocation3 + $0x40] sm:$0xff] %vm170_vm2, %v520_v0  ;;  %180 = vst.msk [vmem:[#allocation3 + $0x48] sm:$0xff] %vm170_vm2, %v520_v0 }
  0x29   :  { %181 = vst.msk [vmem:[#allocation3 + $0x50] sm:$0xff] %vm170_vm2, %v520_v0  ;;  %182 = vst.msk [vmem:[#allocation3 + $0x58] sm:$0xff] %vm170_vm2, %v520_v0 }
  0x2a   :  { %183 = vst.msk [vmem:[#allocation3 + $0x60] sm:$0xff] %vm170_vm2, %v520_v0  ;;  %184 = vst.msk [vmem:[#allocation3 + $0x68] sm:$0xff] %vm170_vm2, %v520_v0 }
  0x2b   :  { %185 = vst.msk [vmem:[#allocation3 + $0x70] sm:$0xff] %vm170_vm2, %v520_v0  ;;  %186 = vst.msk [vmem:[#allocation3 + $0x78] sm:$0xff] %vm170_vm2, %v520_v0 }
  0x2c   :  { %57 = vst.msk [vmem:[#allocation2 + $0x1] sm:$0xff] %vm56_vm3, %v40_v1  ;;  %58 = vst.msk [vmem:[#allocation2 + $0x9] sm:$0xff] %vm56_vm3, %v41_v2 }
  0x2d   :  { %59 = vst.msk [vmem:[#allocation2 + $0x19] sm:$0xff] %vm56_vm3, %v42_v3  ;;  %60 = vst.msk [vmem:[#allocation2 + $0x21] sm:$0xff] %vm56_vm3, %v43_v4 }
  0x2e   :  { %61 = vst.msk [vmem:[#allocation2 + $0x31] sm:$0xff] %vm56_vm3, %v44_v5  ;;  %62 = vst.msk [vmem:[#allocation2 + $0x39] sm:$0xff] %vm56_vm3, %v45_v6 }
  0x2f   :  { %63 = vst.msk [vmem:[#allocation2 + $0x49] sm:$0xff] %vm56_vm3, %v46_v7  ;;  %64 = vst.msk [vmem:[#allocation2 + $0x51] sm:$0xff] %vm56_vm3, %v47_v8 }
  0x30   :  { %65 = vst.msk [vmem:[#allocation2 + $0x61] sm:$0xff] %vm56_vm3, %v48_v9  ;;  %66 = vst.msk [vmem:[#allocation2 + $0x69] sm:$0xff] %vm56_vm3, %v49_v10 }
  0x31   :  { %67 = vst.msk [vmem:[#allocation2 + $0x79] sm:$0xff] %vm56_vm3, %v50_v11  ;;  %68 = vst.msk [vmem:[#allocation2 + $0x81] sm:$0xff] %vm56_vm3, %v51_v12 }
  0x32   :  { %69 = vst.msk [vmem:[#allocation2 + $0x91] sm:$0xff] %vm56_vm3, %v52_v13  ;;  %70 = vst.msk [vmem:[#allocation2 + $0x99] sm:$0xff] %vm56_vm3, %v53_v14 }
  0x33   :  { %71 = vst.msk [vmem:[#allocation2 + $0xa9] sm:$0xff] %vm56_vm3, %v54_v15  ;;  %72 = vst.msk [vmem:[#allocation2 + $0xb1] sm:$0xff] %vm56_vm3, %v55_v16  ;;  %v73_v17 = vld [vmem:[#allocation2] sm:$0xff]  ;;  %v74_v25 = vld [vmem:[#allocation2 + $0x8] sm:$0xff] }
  0x34   :  { %v89_v18 = vld [vmem:[#allocation2 + $0x1] sm:$0xff]  ;;  %v75_v21 = vld [vmem:[#allocation2 + $0x18] sm:$0xff]  ;;  %v90_v26 = vld [vmem:[#allocation2 + $0x9] sm:$0xff] }
  0x35   :  { %v121_v19 = vld [vmem:[#allocation2 + $0x2] sm:$0xff]  ;;  %v105_v20 = vmax.f32 %v73_v17, %v89_v18  ;;  %v91_v22 = vld [vmem:[#allocation2 + $0x19] sm:$0xff]  ;;  %v122_v27 = vld [vmem:[#allocation2 + $0xa] sm:$0xff]  ;;  %v106_v29 = vmax.f32 %v74_v25, %v90_v26 }
  0x36   :  { %v123_v23 = vld [vmem:[#allocation2 + $0x1a] sm:$0xff]  ;;  %v107_v24 = vmax.f32 %v75_v21, %v91_v22  ;;  %v124_v32 = vld [vmem:[#allocation2 + $0x22] sm:$0xff]  ;;  %v77_v35 = vld [vmem:[#allocation2 + $0x30] sm:$0xff] }
  0x37   :  { %v137_v28 = vmax.f32 %v105_v20, %v121_v19  ;;  %v76_v30 = vld [vmem:[#allocation2 + $0x20] sm:$0xff]  ;;  %v93_v36 = vld [vmem:[#allocation2 + $0x31] sm:$0xff]  ;;  %v138_v37 = vmax.f32 %v106_v29, %v122_v27  ;;  %v79_v44 = vld [vmem:[#allocation2 + $0x48] sm:$0xff] }
  0x38   :  { %v92_v31 = vld [vmem:[#allocation2 + $0x21] sm:$0xff]  ;;  %v139_v33 = vmax.f32 %v107_v24, %v123_v23  ;;  %v109_v38 = vmax.f32 %v77_v35, %v93_v36  ;;  %v78_v39 = vld [vmem:[#allocation2 + $0x38] sm:$0xff]  ;;  %v95_v45 = vld [vmem:[#allocation2 + $0x49] sm:$0xff] }
  0x39   :  { %v108_v34 = vmax.f32 %v76_v30, %v92_v31  ;;  %203 = vrot.lane.b32.xlu0 %v137_v28, %s521_s0  ;;  %v94_v40 = vld [vmem:[#allocation2 + $0x39] sm:$0xff]  ;;  %v80_v47 = vld [vmem:[#allocation2 + $0x50] sm:$0xff]  ;;  %v111_v50 = vmax.f32 %v79_v44, %v95_v45  ;;  %v97_v55 = vld [vmem:[#allocation2 + $0x61] sm:$0xff] }
  0x3a   :  { %207 = vrot.lane.b32.xlu1 %v139_v33, %s521_s0  ;;  %v125_v42 = vld [vmem:[#allocation2 + $0x32] sm:$0xff]  ;;  %v110_v43 = vmax.f32 %v78_v39, %v94_v40  ;;  %v126_v46 = vld [vmem:[#allocation2 + $0x3a] sm:$0xff]  ;;  %v127_v52 = vld [vmem:[#allocation2 + $0x4a] sm:$0xff] }
  0x3b   :  { %v140_v41 = vmax.f32 %v108_v34, %v124_v32  ;;  %v96_v48 = vld [vmem:[#allocation2 + $0x51] sm:$0xff]  ;;  %v141_v49 = vmax.f32 %v109_v38, %v125_v42  ;;  %v81_v54 = vld [vmem:[#allocation2 + $0x60] sm:$0xff]  ;;  %v82_v57 = vld [vmem:[#allocation2 + $0x68] sm:$0xff]  ;;  %v143_v59 = vmax.f32 %v111_v50, %v127_v52 }
  0x3c   :  { %v142_v51 = vmax.f32 %v110_v43, %v126_v46  ;;  %v112_v53 = vmax.f32 %v80_v47, %v96_v48  ;;  %v128_v56 = vld [vmem:[#allocation2 + $0x52] sm:$0xff]  ;;  %v98_v58 = vld [vmem:[#allocation2 + $0x69] sm:$0xff]  ;;  %v113_v60 = vmax.f32 %v81_v54, %v97_v55  ;;  %v84_v3 = vld [vmem:[#allocation2 + $0x80] sm:$0xff] }
  0x3d   :  { %205 = vrot.lane.b32.xlu0 %v138_v37, %s521_s0  ;;  %v129_v62 = vld [vmem:[#allocation2 + $0x62] sm:$0xff]  ;;  %v114_v63 = vmax.f32 %v82_v57, %v98_v58  ;;  %v83_v0 = vld [vmem:[#allocation2 + $0x78] sm:$0xff]  ;;  %v130_v2 = vld [vmem:[#allocation2 + $0x6a] sm:$0xff] }
  0x3e   :  { %209 = vrot.lane.b32.xlu1 %v140_v41, %s521_s0  ;;  %v144_v61 = vmax.f32 %v112_v53, %v128_v56  ;;  %v99_v1 = vld [vmem:[#allocation2 + $0x79] sm:$0xff]  ;;  %v100_v4 = vld [vmem:[#allocation2 + $0x81] sm:$0xff]  ;;  %v145_v5 = vmax.f32 %v113_v60, %v129_v62  ;;  %v85_v10 = vld [vmem:[#allocation2 + $0x90] sm:$0xff] }
  0x3f   :  { %v115_v6 = vmax.f32 %v83_v0, %v99_v1  ;;  %v146_v7 = vmax.f32 %v114_v63, %v130_v2  ;;  %v131_v8 = vld [vmem:[#allocation2 + $0x7a] sm:$0xff]  ;;  %v116_v9 = vmax.f32 %v84_v3, %v100_v4  ;;  %v101_v11 = vld [vmem:[#allocation2 + $0x91] sm:$0xff]  ;;  %v132_v12 = vld [vmem:[#allocation2 + $0x82] sm:$0xff] }
  0x40   :  { %v86_v13 = vld [vmem:[#allocation2 + $0x98] sm:$0xff]  ;;  %v117_v16 = vmax.f32 %v85_v10, %v101_v11  ;;  %v87_v20 = vld [vmem:[#allocation2 + $0xa8] sm:$0xff]  ;;  %v88_v23 = vld [vmem:[#allocation2 + $0xb0] sm:$0xff] }
  0x41   :  { %211 = vrot.lane.b32.xlu0 %v141_v49, %s521_s0  ;;  %v102_v14 = vld [vmem:[#allocation2 + $0x99] sm:$0xff]  ;;  %v147_v15 = vmax.f32 %v115_v6, %v131_v8  ;;  %v148_v17 = vmax.f32 %v116_v9, %v132_v12  ;;  %v103_v21 = vld [vmem:[#allocation2 + $0xa9] sm:$0xff]  ;;  %v104_v24 = vld [vmem:[#allocation2 + $0xb1] sm:$0xff] }
  0x42   :  { %213 = vrot.lane.b32.xlu1 %v142_v51, %s521_s0  ;;  %v133_v18 = vld [vmem:[#allocation2 + $0x92] sm:$0xff]  ;;  %v118_v19 = vmax.f32 %v86_v13, %v102_v14  ;;  %v134_v22 = vld [vmem:[#allocation2 + $0x9a] sm:$0xff]  ;;  %v119_v26 = vmax.f32 %v87_v20, %v103_v21  ;;  %v135_v28 = vld [vmem:[#allocation2 + $0xaa] sm:$0xff]  ;;  %v120_v29 = vmax.f32 %v88_v23, %v104_v24 }
  0x43   :  { %v149_v25 = vmax.f32 %v117_v16, %v133_v18  ;;  %v136_v30 = vld [vmem:[#allocation2 + $0xb2] sm:$0xff] }
  0x44   :  { %v150_v27 = vmax.f32 %v118_v19, %v134_v22  ;;  %v151_v31 = vmax.f32 %v119_v26, %v135_v28  ;;  %v152_v32 = vmax.f32 %v120_v29, %v136_v30 }
  0x45   :  { %215 = vrot.lane.b32.xlu0 %v143_v59, %s521_s0 }
  0x46   :  { %217 = vrot.lane.b32.xlu1 %v144_v61, %s521_s0 }
  0x49   :  { %219 = vrot.lane.b32.xlu0 %v145_v5, %s521_s0 }
  0x4a   :  { %221 = vrot.lane.b32.xlu1 %v146_v7, %s521_s0 }
  0x4d   :  { %223 = vrot.lane.b32.xlu0 %v147_v15, %s521_s0 }
  0x4e   :  { %225 = vrot.lane.b32.xlu1 %v148_v17, %s521_s0 }
  0x51   :  { %227 = vrot.lane.b32.xlu0 %v149_v25, %s521_s0 }
  0x52   :  { %229 = vrot.lane.b32.xlu1 %v150_v27, %s521_s0 }
  0x55   :  { %231 = vrot.lane.b32.xlu0 %v151_v31, %s521_s0 }
  0x56   :  { %233 = vrot.lane.b32.xlu1 %v152_v32, %s521_s0 }
  0xab   :  { %v204_v33 = vpop.permute.xlu0 %203 }
  0xac   :  { %252 = vst.msk [vmem:[#allocation3] sm:$0xff] %vm251_vm4, %v204_v33  ;;  %v208_v34 = vpop.permute.xlu1 %207 }
  0xad   :  { %254 = vst.msk [vmem:[#allocation3 + $0x10] sm:$0xff] %vm251_vm4, %v208_v34 }
  0xaf   :  { %v206_v35 = vpop.permute.xlu0 %205 }
  0xb0   :  { %253 = vst.msk [vmem:[#allocation3 + $0x8] sm:$0xff] %vm251_vm4, %v206_v35  ;;  %v210_v36 = vpop.permute.xlu1 %209 }
  0xb1   :  { %255 = vst.msk [vmem:[#allocation3 + $0x18] sm:$0xff] %vm251_vm4, %v210_v36 }
  0xb3   :  { %v212_v37 = vpop.permute.xlu0 %211  ;;  %v634_v38 = vld [vmem:[#allocation3] sm:$0xff] }
  0xb4   :  { %256 = vst.msk [vmem:[#allocation3 + $0x20] sm:$0xff] %vm251_vm4, %v212_v37  ;;  %300 = vrot.lane.b32.xlu0 %v634_v38, %s522_s20  ;;  %v214_v39 = vpop.permute.xlu1 %213  ;;  %v640_v40 = vld [vmem:[#allocation3 + $0x10] sm:$0xff] }
  0xb5   :  { %257 = vst.msk [vmem:[#allocation3 + $0x28] sm:$0xff] %vm251_vm4, %v214_v39 }
  0xb7   :  { %v216_v41 = vpop.permute.xlu0 %215  ;;  %v642_v42 = vld [vmem:[#allocation3 + $0x8] sm:$0xff] }
  0xb8   :  { %258 = vst.msk [vmem:[#allocation3 + $0x30] sm:$0xff] %vm251_vm4, %v216_v41  ;;  %304 = vrot.lane.b32.xlu0 %v640_v40, %s522_s20  ;;  %302 = vrot.lane.b32.xlu1 %v642_v42, %s522_s20  ;;  %v218_v43 = vpop.permute.xlu1 %217  ;;  %v650_v44 = vld [vmem:[#allocation3 + $0x18] sm:$0xff] }
  0xb9   :  { %259 = vst.msk [vmem:[#allocation3 + $0x38] sm:$0xff] %vm251_vm4, %v218_v43 }
  0xbb   :  { %v220_v45 = vpop.permute.xlu0 %219  ;;  %v652_v46 = vld [vmem:[#allocation3 + $0x20] sm:$0xff] }
  0xbc   :  { %260 = vst.msk [vmem:[#allocation3 + $0x40] sm:$0xff] %vm251_vm4, %v220_v45  ;;  %306 = vrot.lane.b32.xlu1 %v650_v44, %s522_s20  ;;  %308 = vrot.lane.b32.xlu0 %v652_v46, %s522_s20  ;;  %v222_v47 = vpop.permute.xlu1 %221  ;;  %v660_v48 = vld [vmem:[#allocation3 + $0x28] sm:$0xff] }
  0xbd   :  { %261 = vst.msk [vmem:[#allocation3 + $0x48] sm:$0xff] %vm251_vm4, %v222_v47 }
  0xbf   :  { %v224_v49 = vpop.permute.xlu0 %223  ;;  %v662_v50 = vld [vmem:[#allocation3 + $0x30] sm:$0xff] }
  0xc0   :  { %262 = vst.msk [vmem:[#allocation3 + $0x50] sm:$0xff] %vm251_vm4, %v224_v49  ;;  %310 = vrot.lane.b32.xlu1 %v660_v48, %s522_s20  ;;  %312 = vrot.lane.b32.xlu0 %v662_v50, %s522_s20  ;;  %v226_v51 = vpop.permute.xlu1 %225  ;;  %v670_v52 = vld [vmem:[#allocation3 + $0x38] sm:$0xff] }
  0xc1   :  { %263 = vst.msk [vmem:[#allocation3 + $0x58] sm:$0xff] %vm251_vm4, %v226_v51 }
  0xc3   :  { %v228_v53 = vpop.permute.xlu0 %227  ;;  %v672_v54 = vld [vmem:[#allocation3 + $0x40] sm:$0xff] }
  0xc4   :  { %264 = vst.msk [vmem:[#allocation3 + $0x60] sm:$0xff] %vm251_vm4, %v228_v53  ;;  %314 = vrot.lane.b32.xlu1 %v670_v52, %s522_s20  ;;  %316 = vrot.lane.b32.xlu0 %v672_v54, %s522_s20  ;;  %v230_v55 = vpop.permute.xlu1 %229  ;;  %v680_v56 = vld [vmem:[#allocation3 + $0x48] sm:$0xff] }
  0xc5   :  { %265 = vst.msk [vmem:[#allocation3 + $0x68] sm:$0xff] %vm251_vm4, %v230_v55 }
  0xc7   :  { %v232_v57 = vpop.permute.xlu0 %231  ;;  %v682_v58 = vld [vmem:[#allocation3 + $0x50] sm:$0xff] }
  0xc8   :  { %266 = vst.msk [vmem:[#allocation3 + $0x70] sm:$0xff] %vm251_vm4, %v232_v57  ;;  %318 = vrot.lane.b32.xlu1 %v680_v56, %s522_s20  ;;  %320 = vrot.lane.b32.xlu0 %v682_v58, %s522_s20  ;;  %v234_v59 = vpop.permute.xlu1 %233  ;;  %v690_v60 = vld [vmem:[#allocation3 + $0x58] sm:$0xff] }
  0xc9   :  { %267 = vst.msk [vmem:[#allocation3 + $0x78] sm:$0xff] %vm251_vm4, %v234_v59 }
  0xcb   :  { %v692_v61 = vld [vmem:[#allocation3 + $0x60] sm:$0xff] }
  0xcc   :  { %322 = vrot.lane.b32.xlu1 %v690_v60, %s522_s20  ;;  %324 = vrot.lane.b32.xlu0 %v692_v61, %s522_s20  ;;  %v698_v62 = vld [vmem:[#allocation3 + $0x68] sm:$0xff] }
  0xcf   :  { %v700_v63 = vld [vmem:[#allocation3 + $0x70] sm:$0xff] }
  0xd0   :  { %326 = vrot.lane.b32.xlu1 %v698_v62, %s522_s20  ;;  %328 = vrot.lane.b32.xlu0 %v700_v63, %s522_s20  ;;  %v706_v0 = vld [vmem:[#allocation3 + $0x78] sm:$0xff] }
  0xd4   :  { %330 = vrot.lane.b32.xlu1 %v706_v0, %s522_s20  ;;  %364 = vrot.lane.b32.xlu0 %v634_v38, %s523_s21 }
  0xd8   :  { %366 = vrot.lane.b32.xlu1 %v642_v42, %s523_s21  ;;  %368 = vrot.lane.b32.xlu0 %v640_v40, %s523_s21 }
  0xdc   :  { %370 = vrot.lane.b32.xlu1 %v650_v44, %s523_s21  ;;  %372 = vrot.lane.b32.xlu0 %v652_v46, %s523_s21 }
  0xe0   :  { %374 = vrot.lane.b32.xlu1 %v660_v48, %s523_s21  ;;  %376 = vrot.lane.b32.xlu0 %v662_v50, %s523_s21 }
  0xe4   :  { %378 = vrot.lane.b32.xlu1 %v670_v52, %s523_s21  ;;  %380 = vrot.lane.b32.xlu0 %v672_v54, %s523_s21 }
  0xe8   :  { %382 = vrot.lane.b32.xlu1 %v680_v56, %s523_s21  ;;  %384 = vrot.lane.b32.xlu0 %v682_v58, %s523_s21 }
  0xec   :  { %386 = vrot.lane.b32.xlu1 %v690_v60, %s523_s21  ;;  %388 = vrot.lane.b32.xlu0 %v692_v61, %s523_s21 }
  0xf0   :  { %390 = vrot.lane.b32.xlu1 %v698_v62, %s523_s21  ;;  %392 = vrot.lane.b32.xlu0 %v700_v63, %s523_s21 }
  0xf4   :  { %394 = vrot.lane.b32.xlu1 %v706_v0, %s523_s21 }
 0x126   :  { %v301_v1 = vpop.permute.xlu0 %300 }
 0x127   :  { %v348_v16 = vmax.f32 %v634_v38, %v301_v1 }
 0x12a   :  { %v303_v2 = vpop.permute.xlu1 %302  ;;  %v305_v3 = vpop.permute.xlu0 %304 }
 0x12b   :  { %v349_v20 = vmax.f32 %v642_v42, %v303_v2  ;;  %v350_v21 = vmax.f32 %v640_v40, %v305_v3 }
 0x12e   :  { %v307_v4 = vpop.permute.xlu1 %306  ;;  %v309_v5 = vpop.permute.xlu0 %308 }
 0x12f   :  { %v351_v26 = vmax.f32 %v650_v44, %v307_v4  ;;  %v352_v27 = vmax.f32 %v652_v46, %v309_v5 }
 0x132   :  { %v311_v6 = vpop.permute.xlu1 %310  ;;  %v313_v7 = vpop.permute.xlu0 %312 }
 0x133   :  { %v353_v32 = vmax.f32 %v660_v48, %v311_v6  ;;  %v354_v33 = vmax.f32 %v662_v50, %v313_v7 }
 0x136   :  { %v315_v8 = vpop.permute.xlu1 %314  ;;  %v317_v9 = vpop.permute.xlu0 %316 }
 0x137   :  { %v355_v38 = vmax.f32 %v670_v52, %v315_v8  ;;  %v356_v39 = vmax.f32 %v672_v54, %v317_v9 }
 0x13a   :  { %v319_v10 = vpop.permute.xlu1 %318  ;;  %v321_v11 = vpop.permute.xlu0 %320 }
 0x13b   :  { %v357_v44 = vmax.f32 %v680_v56, %v319_v10  ;;  %v358_v45 = vmax.f32 %v682_v58, %v321_v11 }
 0x13e   :  { %v323_v12 = vpop.permute.xlu1 %322  ;;  %v325_v13 = vpop.permute.xlu0 %324 }
 0x13f   :  { %v359_v50 = vmax.f32 %v690_v60, %v323_v12  ;;  %v360_v51 = vmax.f32 %v692_v61, %v325_v13 }
 0x142   :  { %v327_v14 = vpop.permute.xlu1 %326  ;;  %v329_v15 = vpop.permute.xlu0 %328 }
 0x143   :  { %v361_v56 = vmax.f32 %v698_v62, %v327_v14  ;;  %v362_v57 = vmax.f32 %v700_v63, %v329_v15 }
 0x146   :  { %v727_v17 = vpop.permute.xlu1 %330  ;;  %v365_v18 = vpop.permute.xlu0 %364 }
 0x147   :  { %v412_v19 = vmax.f32 %v348_v16, %v365_v18  ;;  %v363_v1 = vmax.f32 %v706_v0, %v727_v17 }
 0x149   :  { %428 = vst.msk [vmem:[#allocation7] sm:$0xff] %vm56_vm3, %v412_v19 }
 0x14a   :  { %v367_v22 = vpop.permute.xlu1 %366  ;;  %v369_v23 = vpop.permute.xlu0 %368 }
 0x14b   :  { %v413_v24 = vmax.f32 %v349_v20, %v367_v22  ;;  %v414_v25 = vmax.f32 %v350_v21, %v369_v23 }
 0x14d   :  { %429 = vst.msk [vmem:[#allocation7 + $0x8] sm:$0xff] %vm56_vm3, %v413_v24  ;;  %430 = vst.msk [vmem:[#allocation7 + $0x10] sm:$0xff] %vm56_vm3, %v414_v25 }
 0x14e   :  { %v371_v28 = vpop.permute.xlu1 %370  ;;  %v373_v29 = vpop.permute.xlu0 %372 }
 0x14f   :  { %v415_v30 = vmax.f32 %v351_v26, %v371_v28  ;;  %v416_v31 = vmax.f32 %v352_v27, %v373_v29 }
 0x151   :  { %431 = vst.msk [vmem:[#allocation7 + $0x18] sm:$0xff] %vm56_vm3, %v415_v30  ;;  %432 = vst.msk [vmem:[#allocation7 + $0x20] sm:$0xff] %vm56_vm3, %v416_v31 }
 0x152   :  { %v375_v34 = vpop.permute.xlu1 %374  ;;  %v377_v35 = vpop.permute.xlu0 %376 }
 0x153   :  { %v417_v36 = vmax.f32 %v353_v32, %v375_v34  ;;  %v418_v37 = vmax.f32 %v354_v33, %v377_v35 }
 0x155   :  { %433 = vst.msk [vmem:[#allocation7 + $0x28] sm:$0xff] %vm56_vm3, %v417_v36  ;;  %434 = vst.msk [vmem:[#allocation7 + $0x30] sm:$0xff] %vm56_vm3, %v418_v37 }
 0x156   :  { %v379_v40 = vpop.permute.xlu1 %378  ;;  %v381_v41 = vpop.permute.xlu0 %380 }
 0x157   :  { %v419_v42 = vmax.f32 %v355_v38, %v379_v40  ;;  %v420_v43 = vmax.f32 %v356_v39, %v381_v41 }
 0x159   :  { %435 = vst.msk [vmem:[#allocation7 + $0x38] sm:$0xff] %vm56_vm3, %v419_v42  ;;  %436 = vst.msk [vmem:[#allocation7 + $0x40] sm:$0xff] %vm56_vm3, %v420_v43 }
 0x15a   :  { %v383_v46 = vpop.permute.xlu1 %382  ;;  %v385_v47 = vpop.permute.xlu0 %384 }
 0x15b   :  { %v421_v48 = vmax.f32 %v357_v44, %v383_v46  ;;  %v422_v49 = vmax.f32 %v358_v45, %v385_v47 }
 0x15d   :  { %437 = vst.msk [vmem:[#allocation7 + $0x48] sm:$0xff] %vm56_vm3, %v421_v48  ;;  %438 = vst.msk [vmem:[#allocation7 + $0x50] sm:$0xff] %vm56_vm3, %v422_v49 }
 0x15e   :  { %v387_v52 = vpop.permute.xlu1 %386  ;;  %v389_v53 = vpop.permute.xlu0 %388 }
 0x15f   :  { %v423_v54 = vmax.f32 %v359_v50, %v387_v52  ;;  %v424_v55 = vmax.f32 %v360_v51, %v389_v53 }
 0x161   :  { %439 = vst.msk [vmem:[#allocation7 + $0x58] sm:$0xff] %vm56_vm3, %v423_v54  ;;  %440 = vst.msk [vmem:[#allocation7 + $0x60] sm:$0xff] %vm56_vm3, %v424_v55 }
 0x162   :  { %v391_v58 = vpop.permute.xlu1 %390  ;;  %v393_v59 = vpop.permute.xlu0 %392 }
 0x163   :  { %v425_v60 = vmax.f32 %v361_v56, %v391_v58  ;;  %v426_v61 = vmax.f32 %v362_v57, %v393_v59 }
 0x165   :  { %441 = vst.msk [vmem:[#allocation7 + $0x68] sm:$0xff] %vm56_vm3, %v425_v60  ;;  %442 = vst.msk [vmem:[#allocation7 + $0x70] sm:$0xff] %vm56_vm3, %v426_v61 }
 0x166   :  { %v395_v62 = vpop.permute.xlu1 %394 }
 0x167   :  { %v427_v2 = vmax.f32 %v363_v1, %v395_v62 }
 0x169   :  { %443 = vst.msk [vmem:[#allocation7 + $0x78] sm:$0xff] %vm56_vm3, %v427_v2 }
 0x16a   :  { %502 = shalt.err (!%p499_p12)
}
 0x16b   :  { %s503_s27 = scalar_lea.hbm %s777_s1, 2048 }
 0x16c   :  { %p504_p13 = scmp.ne.s32.totalorder %s777_s1, %s503_s27  ;;  %p507_p0 = scmp.lt.u32.totalorder %s503_s27, %s777_s1 }
 0x16e   :  { %p509_p1 = pnand %p507_p0, %p504_p13 }
 0x170   :  { %512 = shalt.err (!%p509_p1)
}
 0x171   :  { %455 = dma.vmem_to_hbm [thread:$0]  %s450_s23, 2048, %s777_s1, [#allocation6], %s518_s16, %s518_s16, %s519_s17  }
 0x172   :  { %515 = dma.done.wait [#allocation6], 2048  }
 0x173   :  { %516 = vsyncadd [#allocation6], 4294965248 }
 0x174   :  { %459 = vsyncpa [#allocation5], 1 }
 0x175   :  { %460 = vsyncpa [#allocation6], 1 }

</bundles_post_ra>
